<compile_context>
chip_gen: v6e
topology: v6e:2x2x1
jax: 0.10.0
libtpu: 0.0.40
codegen_flags: <defaults>
</compile_context>

<pallas_src>
import jax
import jax.numpy as jnp
from jax import lax
from jax.experimental import pallas as pl
from jax.experimental.pallas import tpu as pltpu

NEG_SLOPE = 0.01  # torch.nn.LeakyReLU default


def _round_up(x, m):
    return ((x + m - 1) // m) * m


# --------------------------------------------------------------------------- #
# Kernel 1: one-shot fusion of Embedding table + Linear + LeakyReLU.
#   fused = LeakyReLU(table @ W^T + b)     (A, E)
# --------------------------------------------------------------------------- #
def _fuse_table_kernel(table_ref, w_ref, b_ref, fused_ref):
    z = lax.dot_general(
        table_ref[...], w_ref[...],
        dimension_numbers=(((1,), (1,)), ((), ())),     # table @ W^T, no host transpose
        preferred_element_type=jnp.float32,
    ) + b_ref[...]
    fused_ref[...] = jnp.where(z >= 0, z, NEG_SLOPE * z).astype(fused_ref.dtype)


# --------------------------------------------------------------------------- #
# Kernel 2: tiled lookup against the fused, pre-activated table.
#   out[t] = fused_table[ids[t]]   (exact gather via one-hot @ table on the MXU)
#   Optional: tile 0 / row 0 is replaced by the shift-padding row (SAR alignment).
# --------------------------------------------------------------------------- #
def _lookup_body(acs_ref, fused_ref, out_ref, pad_ref):
    ids = acs_ref[...]                                        # (tT, 1) int32
    tT = ids.shape[0]
    A = fused_ref.shape[0]

    col = lax.broadcasted_iota(jnp.int32, (tT, A), 1)         # (tT, A)
    onehot = (col == ids).astype(fused_ref.dtype)             # exact one-hot rows
    out = jnp.dot(onehot, fused_ref[...],
                  preferred_element_type=jnp.float32)         # (tT, E)

    if pad_ref is not None:
        # Fused shift_padding: global row 0 gets the padding value.
        row = lax.broadcasted_iota(jnp.int32, (tT, 1), 0)
        is_pad_row = (pl.program_id(0) == 0) & (row == 0)     # (tT, 1) bool
        out = jnp.where(is_pad_row, pad_ref[...], out)        # pad_ref: (1, E)

    out_ref[...] = out.astype(out_ref.dtype)


def _lookup_kernel_pad(acs_ref, fused_ref, pad_ref, out_ref):
    _lookup_body(acs_ref, fused_ref, out_ref, pad_ref)


def _lookup_kernel_nopad(acs_ref, fused_ref, out_ref):
    _lookup_body(acs_ref, fused_ref, out_ref, None)


# --------------------------------------------------------------------------- #
# Wrapper matching DiscreteAcsEncoder.forward
# --------------------------------------------------------------------------- #
def discrete_acs_encoder(acs, emb_table, lin_w, lin_b, shift_padding=None,
                         max_tile=1024):
    """acs: (T, 1) int; emb_table: (A, E); lin_w: (E, E); lin_b: (E,);
    shift_padding: optional (1, 1, E).  Returns (T, 1, E) float32."""
    T = acs.shape[0]
    A, E = emb_table.shape

    # --- one-shot fused activated table (tiny: A x E) -------------------- #
    fused = pl.pallas_call(
        _fuse_table_kernel,
        out_shape=jax.ShapeDtypeStruct((A, E), jnp.float32),
        grid=(1,),
        in_specs=[
            pl.BlockSpec((A, E), lambda i: (0, 0)),
            pl.BlockSpec((E, E), lambda i: (0, 0)),
            pl.BlockSpec((1, E), lambda i: (0, 0)),
        ],
        out_specs=pl.BlockSpec((A, E), lambda i: (0, 0)),
        compiler_params=pltpu.CompilerParams(
            dimension_semantics=("arbitrary",)),
    )(emb_table, lin_w, lin_b.reshape(1, E))

    # --- prepare ids (glue on T*4 bytes only) ----------------------------- #
    ids = acs.astype(jnp.int32).reshape(T, 1)
    use_pad = shift_padding is not None
    if use_pad:
        # out[t] = f(acs[t-1]) for t >= 1; row 0 is overwritten with padding
        # inside the kernel, so we just roll the tiny id vector here.
        ids = jnp.roll(ids, 1, axis=0)
        pad_row = shift_padding.reshape(1, E).astype(jnp.float32)

    # --- tiling over T: lane-dense E=128, rows a multiple of 8 ------------ #
    tT = min(max_tile, _round_up(T, 8))
    T_pad = _round_up(T, tT)
    if T_pad != T:
        ids = jnp.pad(ids, ((0, T_pad - T), (0, 0)))          # padded rows sliced off below
    grid = (T_pad // tT,)

    in_specs = [
        pl.BlockSpec((tT, 1), lambda i: (i, 0)),              # per-tile ids
        pl.BlockSpec((A, E), lambda i: (0, 0)),               # fused table stays resident
    ]
    args = [ids, fused]
    kernel = _lookup_kernel_nopad
    if use_pad:
        in_specs.append(pl.BlockSpec((1, E), lambda i: (0, 0)))
        args.append(pad_row)
        kernel = _lookup_kernel_pad

    out2d = pl.pallas_call(
        kernel,
        out_shape=jax.ShapeDtypeStruct((T_pad, E), jnp.float32),
        grid=grid,
        in_specs=in_specs,
        out_specs=pl.BlockSpec((tT, E), lambda i: (i, 0)),
        compiler_params=pltpu.CompilerParams(
            dimension_semantics=("parallel",)),               # megacore sharding on v7x
        cost_estimate=pl.CostEstimate(
            flops=2 * T_pad * A * E,
            transcendentals=0,
            bytes_accessed=T_pad * 4 + A * E * 4 + E * 4 + T_pad * E * 4),
    )(*args)

    if T_pad != T:
        out2d = out2d[:T]
    # Restore the (T, 1, E) shape of the PyTorch output (trailing singleton kept by Embedding).
    return out2d.reshape(T, 1, E)


# --------------------------------------------------------------------------- #
# Pure-JAX reference of the PyTorch forward (for the sanity check)
# --------------------------------------------------------------------------- #
def _reference(acs, emb_table, lin_w, lin_b, shift_padding=None):
    emb = emb_table[acs.astype(jnp.int32).squeeze(-1)]          # (T, E)
    z = emb @ lin_w.T + lin_b
    y = jnp.where(z >= 0, z, NEG_SLOPE * z)[:, None, :]          # (T, 1, E)
    if shift_padding is not None:
        y = jnp.concatenate([shift_padding, y[:-1]], axis=0)
    return y


if __name__ == "__main__":
    key = jax.random.PRNGKey(0)
    k_acs, k_tab, k_w, k_b, k_pad = jax.random.split(key, 5)

    traj_len, action_dim, emb_dim = 8, 16, 128

    emb_table = jax.random.normal(k_tab, (action_dim, emb_dim), jnp.float32) * 0.1
    lin_w = jax.random.normal(k_w, (emb_dim, emb_dim), jnp.float32) * 0.05
    lin_b = jax.random.normal(k_b, (emb_dim,), jnp.float32) * 0.05
    acs = jax.random.randint(k_acs, (traj_len, 1), 0, action_dim, dtype=jnp.int32)
    shift_padding = jax.random.normal(k_pad, (1, 1, emb_dim), jnp.float32)

    # Path 1: with shift_padding (shift fused into the kernel output).
    out = discrete_acs_encoder(acs, emb_table, lin_w, lin_b, shift_padding=shift_padding)
    out = jax.block_until_ready(out)
    ref = _reference(acs, emb_table, lin_w, lin_b, shift_padding=shift_padding)
    assert out.shape == (traj_len, 1, emb_dim)
    assert jnp.allclose(out, ref, rtol=1e-4, atol=1e-4)

    # Path 2: no shift_padding.
    out2 = jax.block_until_ready(discrete_acs_encoder(acs, emb_table, lin_w, lin_b))
    ref2 = _reference(acs, emb_table, lin_w, lin_b)
    assert jnp.allclose(out2, ref2, rtol=1e-4, atol=1e-4)

    # Path 3: multi-tile grid over T (small max_tile forces several grid steps).
    T2 = 40
    acs2 = jax.random.randint(k_acs, (T2, 1), 0, action_dim, dtype=jnp.int32)
    out3 = jax.block_until_ready(
        discrete_acs_encoder(acs2, emb_table, lin_w, lin_b,
                             shift_padding=shift_padding, max_tile=8))
    ref3 = _reference(acs2, emb_table, lin_w, lin_b, shift_padding=shift_padding)
    assert jnp.allclose(out3, ref3, rtol=1e-4, atol=1e-4)

    print("KERNEL_OK")
</pallas_src>

<mosaic_0001>
module attributes {stable_mosaic.version = 11 : i64} {
  func.func @_fuse_table_kernel(%arg0: i32, %arg1: memref<16x128xf32, #tpu.memory_space<vmem>>, %arg2: memref<128x128xf32, #tpu.memory_space<vmem>>, %arg3: memref<1x128xf32, #tpu.memory_space<vmem>>, %arg4: memref<16x128xf32, #tpu.memory_space<vmem>>) attributes {dimension_semantics = [#tpu.dimension_semantics<arbitrary>], iteration_bounds = array<i64: 1>, scalar_prefetch = 0 : i64, scratch_operands = 0 : i64, tpu.core_type = #tpu.core_type<tc>, window_params = [{pipeline_mode = #tpu.pipeline_mode<synchronous>, transform_indices = @transform_0, window_bounds = array<i64: 16, 128>}, {pipeline_mode = #tpu.pipeline_mode<synchronous>, transform_indices = @transform_1, window_bounds = array<i64: 128, 128>}, {pipeline_mode = #tpu.pipeline_mode<synchronous>, transform_indices = @transform_2, window_bounds = array<i64: 1, 128>}, {pipeline_mode = #tpu.pipeline_mode<synchronous>, transform_indices = @transform_3, window_bounds = array<i64: 16, 128>}]} {
    %c0 = arith.constant 0 : index
    %c0_0 = arith.constant 0 : index
    %0 = vector.load %arg1[%c0, %c0_0] : memref<16x128xf32, #tpu.memory_space<vmem>>, vector<16x128xf32>
    %c0_1 = arith.constant 0 : index
    %c0_2 = arith.constant 0 : index
    %1 = vector.load %arg2[%c0_1, %c0_2] : memref<128x128xf32, #tpu.memory_space<vmem>>, vector<128x128xf32>
    %cst = arith.constant dense<0.000000e+00> : vector<16x128xf32>
    %2 = tpu.matmul %0, %1, %cst {dimension_numbers = #tpu.dot_dimension_numbers<[1], [1], [0], [0], [0, 0, 1, 0], [], []>} : vector<16x128xf32>, vector<128x128xf32>, vector<16x128xf32> -> vector<16x128xf32>
    %c0_3 = arith.constant 0 : index
    %c0_4 = arith.constant 0 : index
    %3 = vector.load %arg3[%c0_3, %c0_4] : memref<1x128xf32, #tpu.memory_space<vmem>>, vector<1x128xf32>
    %4 = vector.broadcast %3 : vector<1x128xf32> to vector<16x128xf32>
    %5 = arith.addf %2, %4 : vector<16x128xf32>
    %cst_5 = arith.constant 0.000000e+00 : f32
    %6 = vector.broadcast %cst_5 : f32 to vector<16x128xf32>
    %7 = arith.cmpf oge, %5, %6 : vector<16x128xf32>
    %cst_6 = arith.constant 0.00999999977 : f32
    %8 = vector.broadcast %cst_6 : f32 to vector<16x128xf32>
    %9 = arith.mulf %8, %5 : vector<16x128xf32>
    %10 = arith.select %7, %5, %9 : vector<16x128xi1>, vector<16x128xf32>
    %c0_7 = arith.constant 0 : index
    %c0_8 = arith.constant 0 : index
    %11 = vector.load %arg4[%c0_7, %c0_8] : memref<16x128xf32, #tpu.memory_space<vmem>>, vector<16x128xf32>
    tpu.vector_store %arg4[%c0_7, %c0_8], %10 {strides = array<i32>} : memref<16x128xf32, #tpu.memory_space<vmem>>, vector<16x128xf32>,
    return
  }
  func.func @transform_0(%arg0: i32) -> (i32, i32) {
    %c0_i32 = arith.constant 0 : i32
    %c0_i32_0 = arith.constant 0 : i32
    %c0_i32_1 = arith.constant 0 : i32
    return %c0_i32, %c0_i32_0 : i32, i32
  }
  func.func @transform_1(%arg0: i32) -> (i32, i32) {
    %c0_i32 = arith.constant 0 : i32
    %c0_i32_0 = arith.constant 0 : i32
    %c0_i32_1 = arith.constant 0 : i32
    return %c0_i32, %c0_i32_0 : i32, i32
  }
  func.func @transform_2(%arg0: i32) -> (i32, i32) {
    %c0_i32 = arith.constant 0 : i32
    %c0_i32_0 = arith.constant 0 : i32
    %c0_i32_1 = arith.constant 0 : i32
    return %c0_i32, %c0_i32_0 : i32, i32
  }
  func.func @transform_3(%arg0: i32) -> (i32, i32) {
    %c0_i32 = arith.constant 0 : i32
    %c0_i32_0 = arith.constant 0 : i32
    %c0_i32_1 = arith.constant 0 : i32
    return %c0_i32, %c0_i32_0 : i32, i32
  }
}

</mosaic_0001>

<bundles_post_ra>
// kernel: tpu_custom_call.1
= control target key start
LH: loop header
LB: loop body
LE: loop exit
PB: predicated region body
PF: predicated region fallthrough
CT: control target
= control target key end

     0   :  { %8 = vsyncpa [#allocation3], 0  ;;  %s340_s0 = inlined_call_operand.hbm [shape: f32[16,128], index: 0, kind: input, shape index: {}]   ;;  %s341_s1 = inlined_call_operand.hbm [shape: f32[128,128], index: 1, kind: input, shape index: {}]   ;;  %s342_s2 = inlined_call_operand.vmem [shape: f32[1,128], index: 2, kind: input, shape index: {}]   ;;  %s343_s3 = inlined_call_operand.hbm [shape: f32[16,128], index: 3, kind: output, shape index: {}]  }
   0x1   :  { %9 = vsyncpa [#allocation6], 0 }
   0x2   :  { %10 = vsyncpa [#allocation4], 0  ;;  %s294_s12 = smov [#allocation2]  }
   0x3   :  { %s16_s13 = sshll.u32 %s294_s12, 4  ;;  %s17_s13 = int_to_ptr.vmem [resolvable:$true] %s16_s13 }
   0x4   :  { %s236_s14 = scalar_lea.vmem %s17_s13, 256  ;;  %p241_p1 = scmp.lt.s32.totalorder %s17_s13, %s17_s13 }
   0x5   :  { %p237_p0 = scmp.ne.s32.totalorder %s17_s13, %s236_s14  ;;  %p242_p2 = scmp.lt.s32.totalorder %s236_s14, %s236_s14 }
   0x7   :  { %p243_p3 = por %p242_p2, %p241_p1 }
   0x9   :  { %p244_p4 = pnand %p243_p3, %p237_p0 }
   0xb   :  { %247 = shalt.err (!%p244_p4)
}
   0xc   :  { %s295_s15 = smov 128   ;;  %s296_s16 = smov 8  }
   0xd   :  { %22 = dma.hbm_to_vmem [thread:$0]  %s340_s0, 256, %s17_s13, [#allocation3], %s295_s15, %s295_s15, %s296_s16  }
   0xe   :  { %s297_s19 = smov [#allocation5]  }
   0xf   :  { %s28_s20 = sshll.u32 %s297_s19, 4  ;;  %s29_s20 = int_to_ptr.vmem [resolvable:$true] %s28_s20 }
  0x10   :  { %s256_s21 = scalar_lea.vmem %s29_s20, 2048  ;;  %p261_p6 = scmp.lt.s32.totalorder %s29_s20, %s29_s20 }
  0x11   :  { %p257_p5 = scmp.ne.s32.totalorder %s29_s20, %s256_s21  ;;  %p262_p7 = scmp.lt.s32.totalorder %s256_s21, %s256_s21 }
  0x13   :  { %p263_p8 = por %p262_p7, %p261_p6 }
  0x15   :  { %p264_p9 = pnand %p263_p8, %p257_p5 }
  0x17   :  { %267 = shalt.err (!%p264_p9)
}
  0x18   :  { %34 = dma.hbm_to_vmem [thread:$0]  %s341_s1, 2048, %s29_s20, [#allocation6], %s295_s15, %s295_s15, %s296_s16  }
  0x19   :  { %288 = dma.done.wait [#allocation3], 256  }
  0x1a   :  { %289 = vsyncadd [#allocation3], 4294967040 }
  0x1b   :  { %290 = dma.done.wait [#allocation6], 2048  }
  0x1c   :  { %291 = vsyncadd [#allocation6], 4294965248  ;;  %v60_v0 = vld [vmem:[#allocation5 + $0x78] sm:$0xff]  ;;  %v59_v1 = vld [vmem:[#allocation5 + $0x70] sm:$0xff]  ;;  %s298_s24 = smov [#allocation7]  }
  0x1d   :  { %188 = vmatprep.subr.mxu0 %v60_v0  ;;  %v58_v2 = vld [vmem:[#allocation5 + $0x68] sm:$0xff]  ;;  %v43_v3 = vld [vmem:[#allocation2] sm:$0xff]  ;;  %v57_v4 = vld [vmem:[#allocation5 + $0x60] sm:$0xff]  ;;  %s156_s25 = sshll.u32 %s298_s24, 4  ;;  %s157_s25 = int_to_ptr.vmem [resolvable:$true] %s156_s25 }
  0x1e   :  { %189 = vmatpush3.xpose.msra.mxu0 %v60_v0  ;;  %220 = vmatprep.mubr.f32.mxu0 %v43_v3  ;;  %v56_v5 = vld [vmem:[#allocation5 + $0x58] sm:$0xff]  ;;  %v55_v6 = vld [vmem:[#allocation5 + $0x50] sm:$0xff]  ;;  %v54_v7 = vld [vmem:[#allocation5 + $0x48] sm:$0xff]  ;;  %s268_s26 = scalar_lea.vmem %s157_s25, 256  ;;  %p273_p11 = scmp.lt.s32.totalorder %s157_s25, %s157_s25 }
  0x1f   :  { %190 = vmatprep.subr.mxu0 %v59_v1  ;;  %v53_v8 = vld [vmem:[#allocation5 + $0x40] sm:$0xff]  ;;  %v52_v9 = vld [vmem:[#allocation5 + $0x38] sm:$0xff]  ;;  %v51_v10 = vld [vmem:[#allocation5 + $0x30] sm:$0xff]  ;;  %p269_p10 = scmp.ne.s32.totalorder %s157_s25, %s268_s26  ;;  %p274_p12 = scmp.lt.s32.totalorder %s268_s26, %s268_s26 }
  0x20   :  { %v50_v11 = vld [vmem:[#allocation5 + $0x28] sm:$0xff]  ;;  %v49_v12 = vld [vmem:[#allocation5 + $0x20] sm:$0xff]  ;;  %v48_v13 = vld [vmem:[#allocation5 + $0x18] sm:$0xff] }
  0x21   :  { %v47_v14 = vld [vmem:[#allocation5 + $0x10] sm:$0xff]  ;;  %v46_v15 = vld [vmem:[#allocation5 + $0x8] sm:$0xff]  ;;  %v45_v16 = vld [vmem:[#allocation5] sm:$0xff]  ;;  %p275_p13 = por %p274_p12, %p273_p11 }
  0x22   :  { %191 = vmatpush3.xpose.msra.mxu0 %v59_v1  ;;  %v44_v17 = vld [vmem:[#allocation2 + $0x8] sm:$0xff]  ;;  %v169_v18 = vld [vmem:[%s342_s2] ss:$0 sm:$0xff] }
  0x23   :  { %192 = vmatprep.subr.mxu0 %v58_v2  ;;  %p276_p0 = pnand %p275_p13, %p269_p10 }
  0x26   :  { %193 = vmatpush3.xpose.msra.mxu0 %v58_v2 }
  0x27   :  { %194 = vmatprep.subr.mxu0 %v57_v4 }
  0x2a   :  { %195 = vmatpush3.xpose.msra.mxu0 %v57_v4 }
  0x2b   :  { %196 = vmatprep.subr.mxu0 %v56_v5 }
  0x2e   :  { %197 = vmatpush3.xpose.msra.mxu0 %v56_v5 }
  0x2f   :  { %198 = vmatprep.subr.mxu0 %v55_v6 }
  0x32   :  { %199 = vmatpush3.xpose.msra.mxu0 %v55_v6 }
  0x33   :  { %200 = vmatprep.subr.mxu0 %v54_v7 }
  0x36   :  { %201 = vmatpush3.xpose.msra.mxu0 %v54_v7 }
  0x37   :  { %202 = vmatprep.subr.mxu0 %v53_v8 }
  0x3a   :  { %203 = vmatpush3.xpose.msra.mxu0 %v53_v8 }
  0x3b   :  { %204 = vmatprep.subr.mxu0 %v52_v9 }
  0x3e   :  { %205 = vmatpush3.xpose.msra.mxu0 %v52_v9 }
  0x3f   :  { %206 = vmatprep.subr.mxu0 %v51_v10 }
  0x42   :  { %207 = vmatpush3.xpose.msra.mxu0 %v51_v10 }
  0x43   :  { %208 = vmatprep.subr.mxu0 %v50_v11 }
  0x46   :  { %209 = vmatpush3.xpose.msra.mxu0 %v50_v11 }
  0x47   :  { %210 = vmatprep.subr.mxu0 %v49_v12 }
  0x4a   :  { %211 = vmatpush3.xpose.msra.mxu0 %v49_v12 }
  0x4b   :  { %212 = vmatprep.subr.mxu0 %v48_v13 }
  0x4e   :  { %213 = vmatpush3.xpose.msra.mxu0 %v48_v13 }
  0x4f   :  { %214 = vmatprep.subr.mxu0 %v47_v14 }
  0x52   :  { %215 = vmatpush3.xpose.msra.mxu0 %v47_v14 }
  0x53   :  { %216 = vmatprep.subr.mxu0 %v46_v15 }
  0x56   :  { %217 = vmatpush3.xpose.msra.mxu0 %v46_v15 }
  0x57   :  { %218 = vmatprep.subr.mxu0 %v45_v16 }
  0x5a   :  { %219 = vmatpush3.xpose.msra.mxu0 %v45_v16 }
  0x5d   :  { %221 = vmatmul.mubr.f32.vlgmr.msra.gmra.mxu0 %v44_v17 }
 0x11d   :  { %v222_v19 = vpop.f32.mrf.mxu0 }
 0x11e   :  { %v140_v20 = vadd.f32 %v222_v19, %v169_v18 }
 0x11f   :  { %v134_v21 = vpop.f32.mrf.mxu0 }
 0x120   :  { %vm144_vm0 = vcmp.ge.f32.partialorder %v140_v20, 0.0  ;;  %v146_v22 = vmul.f32 0.01, %v140_v20  ;;  %v135_v23 = vadd.f32 %v169_v18, %v134_v21 }
 0x122   :  { %vm143_vm1 = vcmp.ge.f32.partialorder %v135_v23, 0.0  ;;  %v145_v24 = vmul.f32 0.01, %v135_v23  ;;  %v148_v25 = vsel %vm144_vm0, %v140_v20, %v146_v22 }
 0x123   :  { %150 = vst [vmem:[#allocation7 + $0x8] sm:$0xff] %v148_v25 }
 0x124   :  { %v147_v26 = vsel %vm143_vm1, %v135_v23, %v145_v24 }
 0x125   :  { %149 = vst [vmem:[#allocation7] sm:$0xff] %v147_v26 }
 0x126   :  { %279 = shalt.err (!%p276_p0)
}
 0x127   :  { %162 = dma.vmem_to_hbm [thread:$0]  %s157_s25, 256, %s343_s3, [#allocation4], %s295_s15, %s295_s15, %s296_s16  }
 0x128   :  { %292 = dma.done.wait [#allocation4], 256  }
 0x129   :  { %293 = vsyncadd [#allocation4], 4294967040 }
 0x12a   :  { %166 = vsyncpa [#allocation3], 1 }
 0x12b   :  { %167 = vsyncpa [#allocation6], 1 }
 0x12c   :  { %168 = vsyncpa [#allocation4], 1 }

</bundles_post_ra>
